<compile_context>
chip_gen: v6e
topology: v6e:2x2x1
jax: 0.10.0
libtpu: 0.0.40
codegen_flags: <defaults>
</compile_context>

<pallas_src>
import jax
import jax.numpy as jnp
from jax import lax
from jax.experimental import pallas as pl
from jax.experimental.pallas import tpu as pltpu


def _softplus(x):
    # Numerically stable softplus: max(x, 0) + log1p(exp(-|x|)).
    return jnp.maximum(x, 0.0) + jnp.log1p(jnp.exp(-jnp.abs(x)))


def _bl_sample_kernel(x_ref, wmu_ref, wrho_ref, weps_ref,
                      bmu_ref, brho_ref, beps_ref, out_ref, acc_ref):
    k = pl.program_id(2)

    @pl.when(k == 0)
    def _():
        acc_ref[...] = jnp.zeros_like(acc_ref)

    # Reparameterized weight sample on this (tn, tk) tile.  rho / eps may be
    # streamed in bf16 (half the HBM bytes); the math is done in f32.
    sigma = _softplus(wrho_ref[...].astype(jnp.float32))
    w = wmu_ref[...] + sigma * weps_ref[...].astype(jnp.float32)

    # x @ w.T without materializing a transpose: contract the last dims so the
    # MXU consumes the (out, in) weight tile in its native layout.
    acc_ref[...] += lax.dot_general(
        x_ref[...], w,
        dimension_numbers=(((1,), (1,)), ((), ())),
        preferred_element_type=jnp.float32)

    @pl.when(k == pl.num_programs(2) - 1)
    def _():
        sb = _softplus(brho_ref[...].astype(jnp.float32))
        b = bmu_ref[...] + sb * beps_ref[...].astype(jnp.float32)
        out_ref[...] = (acc_ref[...] + b).astype(out_ref.dtype)


def _bl_mu_kernel(x_ref, wmu_ref, bmu_ref, out_ref, acc_ref):
    k = pl.program_id(2)

    @pl.when(k == 0)
    def _():
        acc_ref[...] = jnp.zeros_like(acc_ref)

    acc_ref[...] += lax.dot_general(
        x_ref[...], wmu_ref[...],
        dimension_numbers=(((1,), (1,)), ((), ())),
        preferred_element_type=jnp.float32)

    @pl.when(k == pl.num_programs(2) - 1)
    def _():
        out_ref[...] = (acc_ref[...] + bmu_ref[...]).astype(out_ref.dtype)


def _round_up(v, m):
    return ((v + m - 1) // m) * m


def _pick_tile(padded_dim, unit, max_units, max_waste_frac=0.125):
    """Largest tile (multiple of `unit`, <= unit*max_units) whose padding waste
    over `padded_dim` is <= max_waste_frac.  Usually the waste is exactly 0."""
    a = padded_dim // unit
    limit = max(1, int(a * max_waste_frac))
    best = 1
    for d in range(1, min(max_units, a) + 1):
        waste = (-a) % d
        if waste == 0 or waste <= limit:
            best = d
    return unit * best


def _pad2(a, rows, cols):
    pr, pc = rows - a.shape[0], cols - a.shape[1]
    if pr or pc:
        a = jnp.pad(a, ((0, pr), (0, pc)))
    return a


def bayesian_linear_forward(x, weight_mu, weight_rho, bias_mu, bias_rho,
                            eps_w=None, eps_b=None, sample=True,
                            noise_dtype=jnp.bfloat16,
                            tile_m=None, tile_n=None, tile_k=None):
    """Pallas-backed forward of BayesianLinear.

    x:          (B, in_features)            float32
    weight_mu:  (out_features, in_features) float32   (PyTorch F.linear layout)
    weight_rho: (out_features, in_features)
    bias_mu:    (out_features,)             float32
    bias_rho:   (out_features,)
    eps_w:      (out_features, in_features) standard-normal noise (sample=True)
    eps_b:      (out_features,)             standard-normal noise (sample=True)
    noise_dtype: dtype used to stream rho / eps (bf16 halves their HBM bytes;
                 float32 reproduces the reference bit-for-bit).
    """
    B, in_f = x.shape
    out_f = weight_mu.shape[0]
    f32 = jnp.float32

    # ---- padding: only to the (8, 128) hardware tile, not to full block
    # multiples (avoids streaming large zero regions through the weight arrays).
    m_pad = _round_up(max(B, 1), 8)
    k_pad = _round_up(in_f, 128)
    n_pad = _round_up(out_f, 128)

    # ---- tile sizing (waste-free divisors preferred; caps chosen so the
    # double-buffered working set stays ~<=16 MiB, well under the explicit
    # 40 MiB VMEM limit and every generation's physical VMEM).
    if tile_m is None:
        tm = _pick_tile(m_pad, 8, 64)             # <= 512 batch rows per tile
    else:
        tm = _round_up(min(tile_m, m_pad), 8)
    m_pad = _round_up(m_pad, tm)

    if tile_k is None:
        tk = _pick_tile(k_pad, 128, 8)            # <= 1024 (v6e/v7x reco)
    else:
        tk = _round_up(min(tile_k, k_pad), 128)
    k_pad = _round_up(k_pad, tk)

    if tile_n is None:
        max_n_units = 4                           # <= 512
        n_units = n_pad // 128
        if m_pad // tm == 1 and n_units >= 2:
            # Guarantee >= 2 steps on a "parallel" grid axis so both
            # TensorCores get work even for single-M-tile batches.
            max_n_units = max(1, min(max_n_units, n_units // 2))
        tn = _pick_tile(n_pad, 128, max_n_units)
    else:
        tn = _round_up(min(tile_n, n_pad), 128)
    n_pad = _round_up(n_pad, tn)

    grid = (m_pad // tm, n_pad // tn, k_pad // tk)
    m_tiles, n_tiles, k_tiles = grid

    x_p = _pad2(x.astype(f32), m_pad, k_pad)
    wmu_p = _pad2(weight_mu.astype(f32), n_pad, k_pad)
    bmu_p = _pad2(bias_mu.astype(f32).reshape(1, out_f), 1, n_pad)

    x_spec = pl.BlockSpec((tm, tk), lambda m, n, k: (m, k))
    w_spec = pl.BlockSpec((tn, tk), lambda m, n, k: (n, k))
    b_spec = pl.BlockSpec((1, tn), lambda m, n, k: (0, n))
    o_spec = pl.BlockSpec((tm, tn), lambda m, n, k: (m, n))

    compiler_params = pltpu.CompilerParams(
        dimension_semantics=("parallel", "parallel", "arbitrary"),
        vmem_limit_bytes=40 * 1024 * 1024)

    if sample:
        if eps_w is None or eps_b is None:
            raise ValueError("sample=True requires eps_w and eps_b")
        nb = jnp.dtype(noise_dtype).itemsize
        wrho_p = _pad2(weight_rho.astype(noise_dtype), n_pad, k_pad)
        weps_p = _pad2(eps_w.astype(noise_dtype), n_pad, k_pad)
        brho_p = _pad2(bias_rho.astype(noise_dtype).reshape(1, out_f), 1, n_pad)
        beps_p = _pad2(eps_b.astype(noise_dtype).reshape(1, out_f), 1, n_pad)

        cost = pl.CostEstimate(
            flops=2 * m_pad * n_pad * k_pad,
            # exp + log1p per weight (and bias) element, recomputed per M tile.
            transcendentals=2 * n_pad * (k_pad + 1) * m_tiles,
            bytes_accessed=((4 + 2 * nb) * n_pad * k_pad * m_tiles   # mu+rho+eps
                            + 4 * m_pad * k_pad * n_tiles            # x per N tile
                            + 4 * m_pad * n_pad                      # output
                            + (4 + 2 * nb) * n_pad * m_tiles))       # bias streams

        out_padded = pl.pallas_call(
            _bl_sample_kernel,
            out_shape=jax.ShapeDtypeStruct((m_pad, n_pad), jnp.float32),
            grid=grid,
            in_specs=[x_spec, w_spec, w_spec, w_spec, b_spec, b_spec, b_spec],
            out_specs=o_spec,
            scratch_shapes=[pltpu.VMEM((tm, tn), jnp.float32)],
            compiler_params=compiler_params,
            cost_estimate=cost,
        )(x_p, wmu_p, wrho_p, weps_p, bmu_p, brho_p, beps_p)
    else:
        # Eval path: mu-only kernel -- no noise / rho traffic, no softplus.
        cost = pl.CostEstimate(
            flops=2 * m_pad * n_pad * k_pad,
            transcendentals=0,
            bytes_accessed=(4 * n_pad * k_pad * m_tiles
                            + 4 * m_pad * k_pad * n_tiles
                            + 4 * m_pad * n_pad
                            + 4 * n_pad * m_tiles))

        out_padded = pl.pallas_call(
            _bl_mu_kernel,
            out_shape=jax.ShapeDtypeStruct((m_pad, n_pad), jnp.float32),
            grid=grid,
            in_specs=[x_spec, w_spec, b_spec],
            out_specs=o_spec,
            scratch_shapes=[pltpu.VMEM((tm, tn), jnp.float32)],
            compiler_params=compiler_params,
            cost_estimate=cost,
        )(x_p, wmu_p, bmu_p)

    return out_padded[:B, :out_f]


def _reference(x, wmu, wrho, bmu, brho, eps_w, eps_b, sample=True,
               noise_dtype=jnp.float32):
    f32 = jnp.float32
    if sample:
        wrho = wrho.astype(noise_dtype).astype(f32)
        eps_w = eps_w.astype(noise_dtype).astype(f32)
        brho = brho.astype(noise_dtype).astype(f32)
        eps_b = eps_b.astype(noise_dtype).astype(f32)
        w = wmu + jax.nn.softplus(wrho) * eps_w
        b = bmu + jax.nn.softplus(brho) * eps_b
    else:
        w, b = wmu, bmu
    return jnp.dot(x, w.T, preferred_element_type=jnp.float32) + b


def _make_inputs(B, in_f, out_f, rho_init=-3.0, seed=0):
    base = jax.random.fold_in(jax.random.PRNGKey(0), seed)
    k = jax.random.split(base, 7)
    x = jax.random.normal(k[0], (B, in_f), jnp.float32)
    wmu = 0.1 * jax.random.normal(k[1], (out_f, in_f), jnp.float32)
    wrho = rho_init + 0.1 * jax.random.normal(k[2], (out_f, in_f), jnp.float32)
    bmu = jax.random.normal(k[3], (out_f,), jnp.float32)
    brho = rho_init + 0.1 * jax.random.normal(k[4], (out_f,), jnp.float32)
    eps_w = jax.random.normal(k[5], (out_f, in_f), jnp.float32)
    eps_b = jax.random.normal(k[6], (out_f,), jnp.float32)
    return x, wmu, wrho, bmu, brho, eps_w, eps_b


if __name__ == "__main__":
    TOL = dict(atol=5e-2, rtol=5e-2)

    # Case 1: small shapes consistent with the module (single-tile grid).
    args1 = _make_inputs(8, 32, 16, seed=0)

    # 1a) sampled path, bf16 rho/eps stream (default fast path).
    out = jax.block_until_ready(bayesian_linear_forward(*args1, sample=True))
    ref = _reference(*args1, sample=True, noise_dtype=jnp.bfloat16)
    assert out.shape == ref.shape
    assert jnp.allclose(out, ref, **TOL), "bf16-noise sampled path mismatch"

    # 1b) sampled path, exact f32 rho/eps stream.
    out32 = jax.block_until_ready(
        bayesian_linear_forward(*args1, sample=True, noise_dtype=jnp.float32))
    ref32 = _reference(*args1, sample=True, noise_dtype=jnp.float32)
    assert jnp.allclose(out32, ref32, **TOL), "f32-noise sampled path mismatch"

    # 1c) eval path (mu only).
    out_det = jax.block_until_ready(bayesian_linear_forward(*args1, sample=False))
    ref_det = _reference(*args1, sample=False)
    assert jnp.allclose(out_det, ref_det, **TOL), "eval path mismatch"

    # Case 2: explicit small tiles -> multi-step (M, N, K) grid exercising the
    # accumulator init/finalize, M tiling and M/N/K padding paths.
    args2 = _make_inputs(20, 256, 192, seed=1)
    out2 = jax.block_until_ready(
        bayesian_linear_forward(*args2, sample=True,
                                tile_m=8, tile_n=128, tile_k=128))
    ref2 = _reference(*args2, sample=True, noise_dtype=jnp.bfloat16)
    assert out2.shape == ref2.shape
    assert jnp.allclose(out2, ref2, **TOL), "tiled path mismatch"

    print("KERNEL_OK")
</pallas_src>

<mosaic_0001>
module attributes {stable_mosaic.version = 11 : i64} {
  func.func @_bl_sample_kernel(%arg0: i32, %arg1: i32, %arg2: i32, %arg3: memref<8x128xf32, #tpu.memory_space<vmem>>, %arg4: memref<128x128xf32, #tpu.memory_space<vmem>>, %arg5: memref<128x128xbf16, #tpu.memory_space<vmem>>, %arg6: memref<128x128xbf16, #tpu.memory_space<vmem>>, %arg7: memref<1x128xf32, #tpu.memory_space<vmem>>, %arg8: memref<1x128xbf16, #tpu.memory_space<vmem>>, %arg9: memref<1x128xbf16, #tpu.memory_space<vmem>>, %arg10: memref<8x128xf32, #tpu.memory_space<vmem>>, %arg11: memref<8x128xf32, #tpu.memory_space<vmem>>) attributes {dimension_semantics = [#tpu.dimension_semantics<parallel>, #tpu.dimension_semantics<parallel>, #tpu.dimension_semantics<arbitrary>], iteration_bounds = array<i64: 1, 1, 1>, scalar_prefetch = 0 : i64, scratch_operands = 1 : i64, tpu.core_type = #tpu.core_type<tc>, window_params = [{transform_indices = @transform_0, window_bounds = array<i64: 8, 128>}, {transform_indices = @transform_1, window_bounds = array<i64: 128, 128>}, {transform_indices = @transform_2, window_bounds = array<i64: 128, 128>}, {transform_indices = @transform_3, window_bounds = array<i64: 128, 128>}, {transform_indices = @transform_4, window_bounds = array<i64: 1, 128>}, {transform_indices = @transform_5, window_bounds = array<i64: 1, 128>}, {transform_indices = @transform_6, window_bounds = array<i64: 1, 128>}, {transform_indices = @transform_7, window_bounds = array<i64: 8, 128>}]} {
    %c0_i32 = arith.constant 0 : i32
    %0 = arith.cmpi eq, %arg2, %c0_i32 : i32
    %1 = arith.extui %0 : i1 to i32
    %c0_i32_0 = arith.constant 0 : i32
    %2 = arith.cmpi ne, %1, %c0_i32_0 : i32
    scf.if %2 {
      %cst_16 = arith.constant 0.000000e+00 : f32
      %26 = vector.broadcast %cst_16 : f32 to vector<8x128xf32>
      %c0_17 = arith.constant 0 : index
      %c0_18 = arith.constant 0 : index
      %27 = vector.load %arg11[%c0_17, %c0_18] : memref<8x128xf32, #tpu.memory_space<vmem>>, vector<8x128xf32>
      tpu.vector_store %arg11[%c0_17, %c0_18], %26 {strides = array<i32>} : memref<8x128xf32, #tpu.memory_space<vmem>>, vector<8x128xf32>,
    } else {
    }
    %c0 = arith.constant 0 : index
    %c0_1 = arith.constant 0 : index
    %3 = vector.load %arg5[%c0, %c0_1] : memref<128x128xbf16, #tpu.memory_space<vmem>>, vector<128x128xbf16>
    %4 = arith.extf %3 : vector<128x128xbf16> to vector<128x128xf32>
    %cst = arith.constant 0.000000e+00 : f32
    %5 = vector.broadcast %cst : f32 to vector<128x128xf32>
    %6 = arith.maximumf %4, %5 : vector<128x128xf32>
    %7 = math.absf %4 : vector<128x128xf32>
    %cst_2 = arith.constant 0.000000e+00 : f32
    %8 = vector.broadcast %cst_2 : f32 to vector<128x128xf32>
    %9 = arith.subf %8, %7 : vector<128x128xf32>
    %10 = math.exp %9 : vector<128x128xf32>
    %11 = math.log1p %10 : vector<128x128xf32>
    %12 = arith.addf %6, %11 : vector<128x128xf32>
    %c0_3 = arith.constant 0 : index
    %c0_4 = arith.constant 0 : index
    %13 = vector.load %arg4[%c0_3, %c0_4] : memref<128x128xf32, #tpu.memory_space<vmem>>, vector<128x128xf32>
    %c0_5 = arith.constant 0 : index
    %c0_6 = arith.constant 0 : index
    %14 = vector.load %arg6[%c0_5, %c0_6] : memref<128x128xbf16, #tpu.memory_space<vmem>>, vector<128x128xbf16>
    %15 = arith.extf %14 : vector<128x128xbf16> to vector<128x128xf32>
    %16 = arith.mulf %12, %15 : vector<128x128xf32>
    %17 = arith.addf %13, %16 : vector<128x128xf32>
    %c0_7 = arith.constant 0 : index
    %c0_8 = arith.constant 0 : index
    %18 = vector.load %arg11[%c0_7, %c0_8] : memref<8x128xf32, #tpu.memory_space<vmem>>, vector<8x128xf32>
    %c0_9 = arith.constant 0 : index
    %c0_10 = arith.constant 0 : index
    %19 = vector.load %arg3[%c0_9, %c0_10] : memref<8x128xf32, #tpu.memory_space<vmem>>, vector<8x128xf32>
    %cst_11 = arith.constant dense<0.000000e+00> : vector<8x128xf32>
    %20 = tpu.matmul %19, %17, %cst_11 {dimension_numbers = #tpu.dot_dimension_numbers<[1], [1], [0], [0], [0, 0, 1, 0], [], []>} : vector<8x128xf32>, vector<128x128xf32>, vector<8x128xf32> -> vector<8x128xf32>
    %21 = arith.addf %18, %20 : vector<8x128xf32>
    %c0_12 = arith.constant 0 : index
    %c0_13 = arith.constant 0 : index
    %22 = vector.load %arg11[%c0_12, %c0_13] : memref<8x128xf32, #tpu.memory_space<vmem>>, vector<8x128xf32>
    tpu.vector_store %arg11[%c0_12, %c0_13], %21 {strides = array<i32>} : memref<8x128xf32, #tpu.memory_space<vmem>>, vector<8x128xf32>,
    %c0_i32_14 = arith.constant 0 : i32
    %23 = arith.cmpi eq, %arg2, %c0_i32_14 : i32
    %24 = arith.extui %23 : i1 to i32
    %c0_i32_15 = arith.constant 0 : i32
    %25 = arith.cmpi ne, %24, %c0_i32_15 : i32
    scf.if %25 {
      %c0_16 = arith.constant 0 : index
      %c0_17 = arith.constant 0 : index
      %26 = vector.load %arg8[%c0_16, %c0_17] : memref<1x128xbf16, #tpu.memory_space<vmem>>, vector<1x128xbf16>
      %27 = arith.extf %26 : vector<1x128xbf16> to vector<1x128xf32>
      %cst_18 = arith.constant 0.000000e+00 : f32
      %28 = vector.broadcast %cst_18 : f32 to vector<1x128xf32>
      %29 = arith.maximumf %27, %28 : vector<1x128xf32>
      %30 = math.absf %27 : vector<1x128xf32>
      %cst_19 = arith.constant 0.000000e+00 : f32
      %31 = vector.broadcast %cst_19 : f32 to vector<1x128xf32>
      %32 = arith.subf %31, %30 : vector<1x128xf32>
      %33 = math.exp %32 : vector<1x128xf32>
      %34 = math.log1p %33 : vector<1x128xf32>
      %35 = arith.addf %29, %34 : vector<1x128xf32>
      %c0_20 = arith.constant 0 : index
      %c0_21 = arith.constant 0 : index
      %36 = vector.load %arg7[%c0_20, %c0_21] : memref<1x128xf32, #tpu.memory_space<vmem>>, vector<1x128xf32>
      %c0_22 = arith.constant 0 : index
      %c0_23 = arith.constant 0 : index
      %37 = vector.load %arg9[%c0_22, %c0_23] : memref<1x128xbf16, #tpu.memory_space<vmem>>, vector<1x128xbf16>
      %38 = arith.extf %37 : vector<1x128xbf16> to vector<1x128xf32>
      %39 = arith.mulf %35, %38 : vector<1x128xf32>
      %40 = arith.addf %36, %39 : vector<1x128xf32>
      %c0_24 = arith.constant 0 : index
      %c0_25 = arith.constant 0 : index
      %41 = vector.load %arg11[%c0_24, %c0_25] : memref<8x128xf32, #tpu.memory_space<vmem>>, vector<8x128xf32>
      %42 = vector.broadcast %40 : vector<1x128xf32> to vector<8x128xf32>
      %43 = arith.addf %41, %42 : vector<8x128xf32>
      %c0_26 = arith.constant 0 : index
      %c0_27 = arith.constant 0 : index
      %44 = vector.load %arg10[%c0_26, %c0_27] : memref<8x128xf32, #tpu.memory_space<vmem>>, vector<8x128xf32>
      tpu.vector_store %arg10[%c0_26, %c0_27], %43 {strides = array<i32>} : memref<8x128xf32, #tpu.memory_space<vmem>>, vector<8x128xf32>,
    } else {
    }
    return
  }
  func.func @transform_0(%arg0: i32, %arg1: i32, %arg2: i32) -> (i32, i32) {
    %c0_i32 = arith.constant 0 : i32
    return %arg0, %arg2 : i32, i32
  }
  func.func @transform_1(%arg0: i32, %arg1: i32, %arg2: i32) -> (i32, i32) {
    %c0_i32 = arith.constant 0 : i32
    return %arg1, %arg2 : i32, i32
  }
  func.func @transform_2(%arg0: i32, %arg1: i32, %arg2: i32) -> (i32, i32) {
    %c0_i32 = arith.constant 0 : i32
    return %arg1, %arg2 : i32, i32
  }
  func.func @transform_3(%arg0: i32, %arg1: i32, %arg2: i32) -> (i32, i32) {
    %c0_i32 = arith.constant 0 : i32
    return %arg1, %arg2 : i32, i32
  }
  func.func @transform_4(%arg0: i32, %arg1: i32, %arg2: i32) -> (i32, i32) {
    %c0_i32 = arith.constant 0 : i32
    %c0_i32_0 = arith.constant 0 : i32
    return %c0_i32, %arg1 : i32, i32
  }
  func.func @transform_5(%arg0: i32, %arg1: i32, %arg2: i32) -> (i32, i32) {
    %c0_i32 = arith.constant 0 : i32
    %c0_i32_0 = arith.constant 0 : i32
    return %c0_i32, %arg1 : i32, i32
  }
  func.func @transform_6(%arg0: i32, %arg1: i32, %arg2: i32) -> (i32, i32) {
    %c0_i32 = arith.constant 0 : i32
    %c0_i32_0 = arith.constant 0 : i32
    return %c0_i32, %arg1 : i32, i32
  }
  func.func @transform_7(%arg0: i32, %arg1: i32, %arg2: i32) -> (i32, i32) {
    %c0_i32 = arith.constant 0 : i32
    return %arg0, %arg1 : i32, i32
  }
}

</mosaic_0001>

<bundles_post_ra>
// kernel: tpu_custom_call.1
= control target key start
LH: loop header
LB: loop body
LE: loop exit
PB: predicated region body
PF: predicated region fallthrough
CT: control target
= control target key end

     0   :  { %12 = vsyncpa [#allocation4], 0  ;;  %s1273_s0 = inlined_call_operand.hbm [shape: f32[8,128], index: 0, kind: input, shape index: {}]   ;;  %s1274_s1 = inlined_call_operand.hbm [shape: f32[128,128], index: 1, kind: input, shape index: {}]   ;;  %s1275_s2 = inlined_call_operand.hbm [shape: bf16[128,128], index: 2, kind: input, shape index: {}]   ;;  %s1276_s3 = inlined_call_operand.hbm [shape: bf16[128,128], index: 3, kind: input, shape index: {}]   ;;  %s1277_s4 = inlined_call_operand.vmem [shape: f32[1,128], index: 4, kind: input, shape index: {}]   ;;  %s1278_s5 = inlined_call_operand.vmem [shape: bf16[1,128], index: 5, kind: input, shape index: {}]   ;;  %s1279_s6 = inlined_call_operand.vmem [shape: bf16[1,128], index: 6, kind: input, shape index: {}]   ;;  %s1280_s7 = inlined_call_operand.hbm [shape: f32[8,128], index: 7, kind: output, shape index: {}]  }
   0x1   :  { %13 = vsyncpa [#allocation7], 0 }
   0x2   :  { %14 = vsyncpa [#allocation10], 0 }
   0x3   :  { %15 = vsyncpa [#allocation5], 0  ;;  %s879_s24 = smov [#allocation6]  }
   0x4   :  { %s31_s25 = sshll.u32 %s879_s24, 4  ;;  %s32_s25 = int_to_ptr.vmem [resolvable:$true] %s31_s25 }
   0x5   :  { %s779_s26 = scalar_lea.vmem %s32_s25, 2048  ;;  %p784_p1 = scmp.lt.s32.totalorder %s32_s25, %s32_s25 }
   0x6   :  { %p780_p0 = scmp.ne.s32.totalorder %s32_s25, %s779_s26  ;;  %p785_p2 = scmp.lt.s32.totalorder %s779_s26, %s779_s26 }
   0x8   :  { %p786_p3 = por %p785_p2, %p784_p1 }
   0xa   :  { %p787_p4 = pnand %p786_p3, %p780_p0 }
   0xc   :  { %790 = shalt.err (!%p787_p4)
}
   0xd   :  { %s880_s27 = smov 128   ;;  %s881_s28 = smov 8  }
   0xe   :  { %37 = dma.hbm_to_vmem [thread:$0]  %s1274_s1, 2048, %s32_s25, [#allocation7], %s880_s27, %s880_s27, %s881_s28  }
   0xf   :  { %s882_s8 = smov [#allocation3]   ;;  %s883_s10 = smov [#allocation8]  }
  0x10   :  { %s22_s9 = sshll.u32 %s882_s8, 4  ;;  %s43_s11 = sshll.u32 %s883_s10, 4  ;;  %s23_s9 = int_to_ptr.vmem [resolvable:$true] %s22_s9  ;;  %s44_s11 = int_to_ptr.vmem [resolvable:$true] %s43_s11 }
  0x11   :  { %s799_s12 = scalar_lea.vmem %s23_s9, 128  ;;  %p804_p6 = scmp.lt.s32.totalorder %s23_s9, %s23_s9 }
  0x12   :  { %p800_p5 = scmp.ne.s32.totalorder %s23_s9, %s799_s12  ;;  %p805_p7 = scmp.lt.s32.totalorder %s799_s12, %s799_s12 }
  0x14   :  { %p806_p8 = por %p805_p7, %p804_p6 }
  0x16   :  { %p807_p9 = pnand %p806_p8, %p800_p5 }
  0x18   :  { %810 = shalt.err (!%p807_p9)
}
  0x19   :  { %25 = dma.hbm_to_vmem [thread:$0]  %s1273_s0, 128, %s23_s9, [#allocation4]  }
  0x1a   :  { %s819_s15 = scalar_lea.vmem %s44_s11, 1024  ;;  %p824_p11 = scmp.lt.s32.totalorder %s44_s11, %s44_s11 }
  0x1b   :  { %p820_p10 = scmp.ne.s32.totalorder %s44_s11, %s819_s15  ;;  %p825_p12 = scmp.lt.s32.totalorder %s819_s15, %s819_s15 }
  0x1d   :  { %p826_p13 = por %p825_p12, %p824_p11 }
  0x1f   :  { %p827_p0 = pnand %p826_p13, %p820_p10 }
  0x21   :  { %830 = shalt.err (!%p827_p0)
}
  0x22   :  { %s884_s1 = smov 64   ;;  %s885_s16 = smov 4  }
  0x23   :  { %49 = dma.hbm_to_vmem [thread:$0]  %s1275_s2, 1024, %s44_s11, [#allocation7], %s884_s1, %s884_s1, %s885_s16  }
  0x24   :  { %s886_s19 = smov [#allocation9]  }
  0x25   :  { %s55_s20 = sshll.u32 %s886_s19, 4  ;;  %s56_s20 = int_to_ptr.vmem [resolvable:$true] %s55_s20 }
  0x26   :  { %s839_s21 = scalar_lea.vmem %s56_s20, 1024  ;;  %p844_p2 = scmp.lt.s32.totalorder %s56_s20, %s56_s20 }
  0x27   :  { %p840_p1 = scmp.ne.s32.totalorder %s56_s20, %s839_s21  ;;  %p845_p3 = scmp.lt.s32.totalorder %s839_s21, %s839_s21 }
  0x29   :  { %p846_p4 = por %p845_p3, %p844_p2 }
  0x2b   :  { %p847_p5 = pnand %p846_p4, %p840_p1 }
  0x2d   :  { %850 = shalt.err (!%p847_p5)
}
  0x2e   :  { %61 = dma.hbm_to_vmem [thread:$0]  %s1276_s3, 1024, %s56_s20, [#allocation10], %s884_s1, %s884_s1, %s885_s16  }
  0x2f   :  { %871 = dma.done.wait [#allocation4], 128  }
  0x30   :  { %872 = vsyncadd [#allocation4], 4294967168 }
  0x31   :  { %873 = dma.done.wait [#allocation7], 3072  }
  0x32   :  { %874 = vsyncadd [#allocation7], 4294964224 }
  0x33   :  { %875 = dma.done.wait [#allocation10], 1024  }
  0x34   :  { %876 = vsyncadd [#allocation10], 4294966272  ;;  %v887_v0 = vmov 0.0   ;;  %vm888_vm0 = vmmov 0   ;;  %v944_v1 = vld [vmem:[#allocation8 + $0x38] sm:$0xff]   ;;  %v948_v4 = vld [vmem:[#allocation8 + $0x30] sm:$0xff]  }
  0x35   :  { %657 = vmatprep.subr.mxu0 %v887_v0  ;;  %689 = vmatprep.mubr.msk.f32.mxu0 %vm888_vm0, %v887_v0  ;;  %v592_v2 = vunpack.c.l.bf16 %v944_v1  ;;  %v593_v3 = vunpack.c.h.bf16 %v944_v1  ;;  %v589_v5 = vunpack.c.h.bf16 %v948_v4  ;;  %v588_v6 = vunpack.c.l.bf16 %v948_v4  ;;  %v956_v9 = vld [vmem:[#allocation8 + $0x28] sm:$0xff]   ;;  %v964_v17 = vld [vmem:[#allocation8 + $0x20] sm:$0xff]   ;;  %v972_v28 = vld [vmem:[#allocation8 + $0x18] sm:$0xff]   ;;  %s889_s26 = smov [#allocation11]  }
  0x36   :  { %v585_v15 = vunpack.c.h.bf16 %v956_v9  ;;  %v584_v16 = vunpack.c.l.bf16 %v956_v9  ;;  %v581_v25 = vunpack.c.h.bf16 %v964_v17  ;;  %v580_v27 = vunpack.c.l.bf16 %v964_v17  ;;  %v984_v44 = vld [vmem:[#allocation8 + $0x10] sm:$0xff]   ;;  %v998_v54 = vld [vmem:[#allocation9 + $0x38] sm:$0xff]   ;;  %v1030_v1 = vld [vmem:[#allocation9 + $0x28] sm:$0xff]   ;;  %s551_s27 = sshll.u32 %s889_s26, 4  ;;  %s552_s27 = int_to_ptr.vmem [resolvable:$true] %s551_s27 }
  0x37   :  { %v147_v7 = vand.u32 2147483647, %v592_v2  ;;  %v148_v8 = vand.u32 2147483647, %v593_v3  ;;  %v146_v10 = vand.u32 2147483647, %v589_v5  ;;  %v577_v35 = vunpack.c.h.bf16 %v972_v28  ;;  %p856_p7 = scmp.lt.s32.totalorder %s552_s27, %s552_s27 }
  0x38   :  { %v145_v13 = vand.u32 2147483647, %v588_v6  ;;  %v144_v22 = vand.u32 2147483647, %v585_v15  ;;  %v143_v24 = vand.u32 2147483647, %v584_v16  ;;  %v576_v37 = vunpack.c.l.bf16 %v972_v28 }
  0x39   :  { %v163_v11 = vsub.f32 0.0, %v147_v7  ;;  %v164_v12 = vsub.f32 0.0, %v148_v8  ;;  %v162_v14 = vsub.f32 0.0, %v146_v10  ;;  %v142_v30 = vand.u32 2147483647, %v581_v25  ;;  %v1008_v60 = vld [vmem:[#allocation9 + $0x30] sm:$0xff]  }
  0x3a   :  { %v161_v20 = vsub.f32 0.0, %v145_v13  ;;  %v160_v26 = vsub.f32 0.0, %v144_v22  ;;  %v159_v29 = vsub.f32 0.0, %v143_v24  ;;  %v141_v32 = vand.u32 2147483647, %v580_v27  ;;  %v1022_v10 = vld [vmem:[#allocation8 + $0x8] sm:$0xff]  }
  0x3b   :  { %v193_v18 = vmul.f32 1.442695, %v163_v11  ;;  %v195_v19 = vmul.f32 1.442695, %v164_v12  ;;  %v191_v21 = vmul.f32 1.442695, %v162_v14  ;;  %v573_v51 = vunpack.c.h.bf16 %v984_v44 }
  0x3c   :  { %v189_v23 = vmul.f32 1.442695, %v161_v20  ;;  %v187_v31 = vmul.f32 1.442695, %v160_v26  ;;  %v185_v33 = vmul.f32 1.442695, %v159_v29  ;;  %v572_v52 = vunpack.c.l.bf16 %v984_v44 }
  0x3d   :  { %703 = vpow2.f32 %v193_v18  ;;  %v158_v34 = vsub.f32 0.0, %v142_v30  ;;  %v157_v36 = vsub.f32 0.0, %v141_v32  ;;  %v140_v39 = vand.u32 2147483647, %v577_v35 }
  0x3e   :  { %705 = vpow2.f32 %v195_v19  ;;  %v139_v42 = vand.u32 2147483647, %v576_v37  ;;  %v1005_v58 = vmax.f32 %v593_v3, 0.0  ;;  %v624_v59 = vunpack.c.l.bf16 %v998_v54 }
  0x3f   :  { %707 = vpow2.f32 %v191_v21  ;;  %v183_v38 = vmul.f32 1.442695, %v158_v34  ;;  %v181_v40 = vmul.f32 1.442695, %v157_v36  ;;  %v156_v41 = vsub.f32 0.0, %v140_v39 }
  0x40   :  { %709 = vpow2.f32 %v189_v23  ;;  %v155_v46 = vsub.f32 0.0, %v139_v42  ;;  %v625_v63 = vunpack.c.h.bf16 %v998_v54  ;;  %v1016_v7 = vmax.f32 %v592_v2, 0.0 }
  0x41   :  { %711 = vpow2.f32 %v187_v31  ;;  %v179_v43 = vmul.f32 1.442695, %v156_v41  ;;  %v138_v8 = vand.u32 2147483647, %v573_v51  ;;  %v137_v3 = vand.u32 2147483647, %v572_v52 }
  0x42   :  { %713 = vpow2.f32 %v185_v33  ;;  %v177_v56 = vmul.f32 1.442695, %v155_v46  ;;  %v1027_v12 = vmax.f32 %v589_v5, 0.0  ;;  %v621_v18 = vunpack.c.h.bf16 %v1008_v60 }
  0x43   :  { %715 = vpow2.f32 %v183_v38  ;;  %v1038_v19 = vmax.f32 %v588_v6, 0.0  ;;  %v569_v21 = vunpack.c.h.bf16 %v1022_v10  ;;  %v620_v22 = vunpack.c.l.bf16 %v1008_v60 }
  0x44   :  { %717 = vpow2.f32 %v181_v40  ;;  %v617_v23 = vunpack.c.h.bf16 %v1030_v1  ;;  %v154_v24 = vsub.f32 0.0, %v138_v8  ;;  %v153_v26 = vsub.f32 0.0, %v137_v3  ;;  %v371_v3 = vld [vmem:[#allocation6 + $0x70] sm:$0xff] }
  0x45   :  { %719 = vpow2.f32 %v179_v43  ;;  %v136_v39 = vand.u32 2147483647, %v569_v21  ;;  %v568_v40 = vunpack.c.l.bf16 %v1022_v10 }
  0x46   :  { %v175_v43 = vmul.f32 1.442695, %v154_v24  ;;  %v173_v46 = vmul.f32 1.442695, %v153_v26 }
  0x4a   :  { %v986_v45 = vpop.eup %703 }
  0x4b   :  { %v988_v47 = vpop.eup %705  ;;  %v323_v48 = vadd.f32 1.0, %v986_v45  ;;  %v326_v11 = vmul.f32 -0.5, %v986_v45  ;;  %v329_v4 = vand.u32 2147483647, %v986_v45 }
  0x4c   :  { %v991_v49 = vpop.eup %707  ;;  %v332_v50 = vadd.f32 1.0, %v988_v47  ;;  %v335_v14 = vmul.f32 -0.5, %v988_v47  ;;  %v338_v33 = vand.u32 2147483647, %v988_v47 }
  0x4d   :  { %v996_v53 = vpop.eup %709  ;;  %721 = vlog2.f32 %v323_v48  ;;  %v314_v55 = vadd.f32 1.0, %v991_v49  ;;  %v317_v20 = vmul.f32 -0.5, %v991_v49  ;;  %v327_v30 = vadd.f32 1.0, %v326_v11 }
  0x4e   :  { %723 = vlog2.f32 %v332_v50  ;;  %v1001_v57 = vpop.eup %711  ;;  %v305_v61 = vadd.f32 1.0, %v996_v53  ;;  %v308_v6 = vmul.f32 -0.5, %v996_v53  ;;  %v336_v32 = vadd.f32 1.0, %v335_v14 }
  0x4f   :  { %725 = vlog2.f32 %v314_v55  ;;  %v1011_v62 = vpop.eup %713  ;;  %v296_v13 = vadd.f32 1.0, %v1001_v57  ;;  %v320_v34 = vand.u32 2147483647, %v991_v49  ;;  %v318_v36 = vadd.f32 1.0, %v317_v20 }
  0x50   :  { %727 = vlog2.f32 %v305_v61  ;;  %v1032_v2 = vpop.eup %715  ;;  %v287_v5 = vadd.f32 1.0, %v1011_v62  ;;  %v311_v38 = vand.u32 2147483647, %v996_v53  ;;  %v299_v41 = vmul.f32 -0.5, %v1001_v57 }
  0x51   :  { %729 = vpow2.f32 %v177_v56  ;;  %v1045_v29 = vpop.eup %717  ;;  %v278_v31 = vadd.f32 1.0, %v1032_v2  ;;  %v328_v50 = vmul.f32 %v986_v45, %v327_v30  ;;  %vm1061_vm1 = vcmp.lt.f32.partialorder %v329_v4, 0.0004427343 }
  0x52   :  { %731 = vlog2.f32 %v296_v13  ;;  %v269_v42 = vadd.f32 1.0, %v1045_v29  ;;  %v1058_v48 = vpop.eup %719  ;;  %v309_v56 = vadd.f32 1.0, %v308_v6  ;;  %v337_v8 = vmul.f32 %v988_v47, %v336_v32 }
  0x53   :  { %733 = vlog2.f32 %v287_v5  ;;  %vm1066_vm2 = vcmp.lt.f32.partialorder %v338_v33, 0.0004427343  ;;  %vm1070_vm3 = vcmp.lt.f32.partialorder %v320_v34, 0.0004427343  ;;  %v290_v13 = vmul.f32 -0.5, %v1011_v62 }
  0x54   :  { %735 = vlog2.f32 %v278_v31  ;;  %v319_v20 = vmul.f32 %v991_v49, %v318_v36  ;;  %vm1076_vm4 = vcmp.lt.f32.partialorder %v311_v38, 0.0004427343  ;;  %v302_v47 = vand.u32 2147483647, %v1001_v57 }
  0x55   :  { %v300_v30 = vadd.f32 1.0, %v299_v41  ;;  %737 = vlog2.f32 %v269_v42  ;;  %v260_v4 = vadd.f32 1.0, %v1058_v48  ;;  %v310_v32 = vmul.f32 %v996_v53, %v309_v56  ;;  %v372_v53 = vld [vmem:[#allocation6 + $0x78] sm:$0xff] }
  0x56   :  { %739 = vpow2.f32 %v175_v43  ;;  %v291_v36 = vadd.f32 1.0, %v290_v13  ;;  %v152_v55 = vsub.f32 0.0, %v136_v39  ;;  %v281_v56 = vmul.f32 -0.5, %v1032_v2 }
  0x57   :  { %741 = vpow2.f32 %v173_v46  ;;  %v301_v13 = vmul.f32 %v1001_v57, %v300_v30  ;;  %vm1105_vm5 = vcmp.lt.f32.partialorder %v302_v47, 0.0004427343  ;;  %v293_v54 = vand.u32 2147483647, %v1011_v62 }
  0x58   :  { %743 = vlog2.f32 %v260_v4  ;;  %v171_v39 = vmul.f32 1.442695, %v152_v55  ;;  %v292_v5 = vmul.f32 %v1011_v62, %v291_v36  ;;  %v284_v57 = vand.u32 2147483647, %v1032_v2 }
  0x59   :  { %v282_v30 = vadd.f32 1.0, %v281_v56  ;;  %v272_v62 = vmul.f32 -0.5, %v1045_v29  ;;  %vm1123_vm6 = vcmp.lt.f32.partialorder %v293_v54, 0.0004427343  ;;  %v127_v36 = vmax.f32 %v584_v16, 0.0  ;;  %v368_v54 = vld [vmem:[#allocation6 + $0x58] sm:$0xff] }
  0x5a   :  { %v722_v61 = vpop.eup %721  ;;  %745 = vpow2.f32 %v171_v39  ;;  %vm1142_vm7 = vcmp.lt.f32.partialorder %v284_v57, 0.0004427343  ;;  %v275_v60 = vand.u32 2147483647, %v1045_v29  ;;  %v125_v57 = vmax.f32 %v580_v27, 0.0  ;;  %v635_v16 = vld [vmem:[#allocation9 + $0x18] sm:$0xff]  }
  0x5b   :  { %v724_v45 = vpop.eup %723  ;;  %v325_v14 = vmul.f32 0.6931472, %v722_v61  ;;  %v283_v56 = vmul.f32 %v1032_v2, %v282_v30  ;;  %v266_v2 = vand.u32 2147483647, %v1058_v48 }
  0x5c   :  { %v726_v24 = vpop.eup %725  ;;  %v334_v26 = vmul.f32 0.6931472, %v724_v45  ;;  %vm1167_vm8 = vcmp.lt.f32.partialorder %v275_v60, 0.0004427343 }
  0x5d   :  { %v331_v6 = vsel %vm1061_vm1, %v328_v50, %v325_v14  ;;  %v316_v31 = vmul.f32 0.6931472, %v726_v24  ;;  %v728_v49 = vpop.eup %727  ;;  %vm1172_vm9 = vcmp.lt.f32.partialorder %v266_v2, 0.0004427343 }
  0x5e   :  { %v340_v33 = vsel %vm1066_vm2, %v337_v8, %v334_v26  ;;  %v355_v34 = vadd.f32 %v331_v6, %v1016_v7  ;;  %v1088_v38 = vpop.eup %729  ;;  %v307_v50 = vmul.f32 0.6931472, %v728_v49  ;;  %v135_v7 = vand.u32 2147483647, %v568_v40  ;;  %v1117_v6 = vld [vmem:[#allocation8] sm:$0xff]  }
  0x5f   :  { %v356_v41 = vadd.f32 %v340_v33, %v1005_v58  ;;  %v322_v42 = vsel %vm1070_vm3, %v319_v20, %v316_v31  ;;  %v732_v61 = vpop.eup %731  ;;  %v263_v33 = vmul.f32 -0.5, %v1058_v48 }
  0x60   :  { %v419_v43 = vmul.f32 %v624_v59, %v355_v34  ;;  %v354_v58 = vadd.f32 %v322_v42, %v1027_v12  ;;  %v313_v8 = vsel %vm1076_vm4, %v310_v32, %v307_v50  ;;  %v298_v11 = vmul.f32 0.6931472, %v732_v61  ;;  %v734_v14 = vpop.eup %733  ;;  %v369_v61 = vld [vmem:[#allocation6 + $0x60] sm:$0xff] }
  0x61   :  { %v420_v46 = vmul.f32 %v625_v63, %v356_v41  ;;  %v251_v59 = vadd.f32 1.0, %v1088_v38  ;;  %v151_v45 = vsub.f32 0.0, %v135_v7  ;;  %v353_v63 = vadd.f32 %v313_v8, %v1038_v19  ;;  %v736_v31 = vpop.eup %735  ;;  %v370_v19 = vld [vmem:[#allocation6 + $0x68] sm:$0xff] }
  0x62   :  { %v128_v12 = vmax.f32 %v585_v15, 0.0  ;;  %v435_v26 = vadd.f32 %v419_v43, %v371_v3  ;;  %v418_v47 = vmul.f32 %v621_v18, %v354_v58  ;;  %v304_v15 = vsel %vm1105_vm5, %v301_v13, %v298_v11  ;;  %v738_v50 = vpop.eup %737 }
  0x63   :  { %v436_v20 = vadd.f32 %v420_v46, %v372_v53  ;;  %v169_v4 = vmul.f32 1.442695, %v151_v45  ;;  %v289_v32 = vmul.f32 0.6931472, %v734_v14  ;;  %747 = vlog2.f32 %v251_v59  ;;  %v1137_v7 = vpop.eup %739  ;;  %v1149_v46 = vld [vmem:[#allocation9 + $0x20] sm:$0xff]  }
  0x64   :  { %v616_v18 = vunpack.c.l.bf16 %v1030_v1  ;;  %v417_v34 = vmul.f32 %v620_v22, %v353_v63  ;;  %v126_v41 = vmax.f32 %v581_v25, 0.0  ;;  %v565_v42 = vunpack.c.h.bf16 %v1117_v6  ;;  %v1147_v22 = vpop.eup %741 }
  0x65   :  { %658 = vmatpush3.xpose.msra.mxu0 %v436_v20  ;;  %749 = vpow2.f32 %v169_v4  ;;  %v434_v55 = vadd.f32 %v418_v47, %v370_v19  ;;  %v352_v53 = vadd.f32 %v304_v15, %v128_v12  ;;  %v280_v43 = vmul.f32 0.6931472, %v736_v31  ;;  %v744_v45 = vpop.eup %743 }
  0x66   :  { %659 = vmatprep.subr.mxu0 %v887_v0  ;;  %v295_v9 = vsel %vm1123_vm6, %v292_v5, %v289_v32  ;;  %v273_v25 = vadd.f32 1.0, %v272_v62  ;;  %v264_v58 = vadd.f32 1.0, %v263_v33  ;;  %v254_v8 = vmul.f32 -0.5, %v1088_v38 }
  0x67   :  { %v242_v39 = vadd.f32 1.0, %v1137_v7  ;;  %v433_v3 = vadd.f32 %v417_v34, %v369_v61  ;;  %v233_v11 = vadd.f32 1.0, %v1147_v22  ;;  %v134_v13 = vand.u32 2147483647, %v565_v42  ;;  %v1176_v47 = vpop.eup %745 }
  0x68   :  { %v564_v59 = vunpack.c.l.bf16 %v1117_v6  ;;  %v416_v14 = vmul.f32 %v617_v23, %v352_v53  ;;  %v351_v20 = vadd.f32 %v295_v9, %v127_v36  ;;  %v286_v24 = vsel %vm1142_vm7, %v283_v56, %v280_v43 }
  0x69   :  { %660 = vmatpush3.xpose.msra.mxu0 %v435_v26  ;;  %751 = vlog2.f32 %v242_v39  ;;  %v613_v63 = vunpack.c.h.bf16 %v1149_v46  ;;  %v271_v12 = vmul.f32 0.6931472, %v738_v50  ;;  %v274_v5 = vmul.f32 %v1045_v29, %v273_v25 }
  0x6a   :  { %661 = vmatprep.subr.mxu0 %v887_v0  ;;  %753 = vlog2.f32 %v233_v11  ;;  %v265_v23 = vmul.f32 %v1058_v48, %v264_v58  ;;  %v350_v30 = vadd.f32 %v286_v24, %v126_v41  ;;  %v255_v4 = vadd.f32 1.0, %v254_v8  ;;  %v367_v48 = vld [vmem:[#allocation6 + $0x50] sm:$0xff] }
  0x6b   :  { %v150_v31 = vsub.f32 0.0, %v134_v13  ;;  %v133_v29 = vand.u32 2147483647, %v564_v59  ;;  %v432_v17 = vadd.f32 %v416_v14, %v368_v54  ;;  %v415_v27 = vmul.f32 %v616_v18, %v351_v20  ;;  %v365_v20 = vld [vmem:[#allocation6 + $0x40] sm:$0xff] }
  0x6c   :  { %v262_v19 = vmul.f32 0.6931472, %v744_v45  ;;  %v224_v15 = vadd.f32 1.0, %v1176_v47  ;;  %v277_v32 = vsel %vm1167_vm8, %v274_v5, %v271_v12  ;;  %v245_v62 = vmul.f32 -0.5, %v1137_v7 }
  0x6d   :  { %662 = vmatpush3.xpose.msra.mxu0 %v434_v55  ;;  %v167_v49 = vmul.f32 1.442695, %v150_v31  ;;  %v149_v33 = vsub.f32 0.0, %v133_v29  ;;  %v612_v36 = vunpack.c.l.bf16 %v1149_v46  ;;  %v124_v41 = vmax.f32 %v577_v35, 0.0  ;;  %v366_v35 = vld [vmem:[#allocation6 + $0x48] sm:$0xff] }
  0x6e   :  { %663 = vmatprep.subr.mxu0 %v887_v0  ;;  %v257_v18 = vand.u32 2147483647, %v1088_v38  ;;  %755 = vlog2.f32 %v224_v15  ;;  %v414_v55 = vmul.f32 %v613_v63, %v350_v30  ;;  %v256_v61 = vmul.f32 %v1088_v38, %v255_v4  ;;  %v634_v4 = vld [vmem:[#allocation9 + $0x10] sm:$0xff]  }
  0x6f   :  { %757 = vpow2.f32 %v167_v49  ;;  %v165_v53 = vmul.f32 1.442695, %v149_v33  ;;  %v431_v43 = vadd.f32 %v415_v27, %v367_v48  ;;  %v349_v56 = vadd.f32 %v277_v32, %v125_v57 }
  0x70   :  { %v748_v34 = vpop.eup %747  ;;  %v268_v9 = vsel %vm1172_vm9, %v265_v23, %v262_v19  ;;  %v246_v46 = vadd.f32 1.0, %v245_v62  ;;  %v236_v58 = vmul.f32 -0.5, %v1147_v22  ;;  %vm1197_vm10 = vcmp.lt.f32.partialorder %v257_v18, 0.0004427343 }
  0x71   :  { %664 = vmatpush3.xpose.msra.mxu0 %v433_v3  ;;  %v253_v60 = vmul.f32 0.6931472, %v748_v34  ;;  %759 = vpow2.f32 %v165_v53  ;;  %v248_v2 = vand.u32 2147483647, %v1137_v7  ;;  %v609_v8 = vunpack.c.h.bf16 %v635_v16 }
  0x72   :  { %665 = vmatprep.subr.mxu0 %v887_v0  ;;  %v1189_v50 = vpop.eup %749  ;;  %v123_v39 = vmax.f32 %v576_v37, 0.0  ;;  %v430_v3 = vadd.f32 %v414_v55, %v366_v35  ;;  %v413_v11 = vmul.f32 %v612_v36, %v349_v56  ;;  %v348_v13 = vadd.f32 %v268_v9, %v124_v41  ;;  %v363_v41 = vld [vmem:[#allocation6 + $0x30] sm:$0xff] }
  0x73   :  { %v215_v25 = vadd.f32 1.0, %v1189_v50  ;;  %v227_v45 = vmul.f32 -0.5, %v1176_v47  ;;  %v259_v24 = vsel %vm1197_vm10, %v256_v61, %v253_v60  ;;  %v247_v54 = vmul.f32 %v1137_v7, %v246_v46  ;;  %v364_v7 = vld [vmem:[#allocation6 + $0x38] sm:$0xff]  ;;  %v633_v60 = vld [vmem:[#allocation9 + $0x8] sm:$0xff]  }
  0x74   :  { %v237_v63 = vadd.f32 1.0, %v236_v58  ;;  %vm1209_vm11 = vcmp.lt.f32.partialorder %v248_v2, 0.0004427343  ;;  %v239_v37 = vand.u32 2147483647, %v1147_v22  ;;  %v608_v57 = vunpack.c.l.bf16 %v635_v16  ;;  %v362_v58 = vld [vmem:[#allocation6 + $0x28] sm:$0xff] }
  0x75   :  { %666 = vmatpush3.xpose.msra.mxu0 %v432_v17  ;;  %761 = vlog2.f32 %v215_v25  ;;  %v122_v1 = vmax.f32 %v573_v51, 0.0  ;;  %v429_v23 = vadd.f32 %v413_v11, %v365_v20  ;;  %v412_v26 = vmul.f32 %v609_v8, %v348_v13  ;;  %v361_v20 = vld [vmem:[#allocation6 + $0x20] sm:$0xff] }
  0x76   :  { %667 = vmatprep.subr.mxu0 %v887_v0  ;;  %v752_v14 = vpop.eup %751  ;;  %v347_v30 = vadd.f32 %v259_v24, %v123_v39  ;;  %v228_v31 = vadd.f32 1.0, %v227_v45  ;;  %v238_v27 = vmul.f32 %v1147_v22, %v237_v63  ;;  %v218_v19 = vmul.f32 -0.5, %v1189_v50 }
  0x77   :  { %v754_v12 = vpop.eup %753  ;;  %v244_v5 = vmul.f32 0.6931472, %v752_v14  ;;  %vm1221_vm12 = vcmp.lt.f32.partialorder %v239_v37, 0.0004427343  ;;  %v230_v51 = vand.u32 2147483647, %v1176_v47  ;;  %v605_v32 = vunpack.c.h.bf16 %v634_v4 }
  0x78   :  { %v235_v17 = vmul.f32 0.6931472, %v754_v12  ;;  %v121_v62 = vmax.f32 %v572_v52, 0.0  ;;  %v428_v33 = vadd.f32 %v412_v26, %v364_v7  ;;  %v411_v34 = vmul.f32 %v608_v57, %v347_v30  ;;  %v360_v57 = vld [vmem:[#allocation6 + $0x18] sm:$0xff]  ;;  %v359_v7 = vld [vmem:[#allocation6 + $0x10] sm:$0xff] }
  0x79   :  { %668 = vmatpush3.xpose.msra.mxu0 %v431_v43  ;;  %v250_v29 = vsel %vm1209_vm11, %v247_v54, %v244_v5  ;;  %v229_v22 = vmul.f32 %v1176_v47, %v228_v31  ;;  %v219_v61 = vadd.f32 1.0, %v218_v19  ;;  %vm1232_vm13 = vcmp.lt.f32.partialorder %v230_v51, 0.0004427343 }
  0x7a   :  { %669 = vmatprep.subr.mxu0 %v887_v0  ;;  %v346_v36 = vadd.f32 %v250_v29, %v122_v1  ;;  %v241_v18 = vsel %vm1221_vm12, %v238_v27, %v235_v17  ;;  %v221_v52 = vand.u32 2147483647, %v1189_v50  ;;  %v604_v9 = vunpack.c.l.bf16 %v634_v4 }
  0x7b   :  { %v756_v48 = vpop.eup %755  ;;  %v120_v47 = vmax.f32 %v569_v21, 0.0  ;;  %v427_v16 = vadd.f32 %v411_v34, %v363_v41  ;;  %v345_v35 = vadd.f32 %v241_v18, %v121_v62  ;;  %v220_v8 = vmul.f32 %v1189_v50, %v219_v61  ;;  %v357_v41 = vld [vmem:[#allocation6] sm:$0xff] }
  0x7c   :  { %v758_v49 = vpop.eup %757  ;;  %v226_v55 = vmul.f32 0.6931472, %v756_v48  ;;  %v410_v25 = vmul.f32 %v605_v32, %v346_v36  ;;  %vm1243_vm14 = vcmp.lt.f32.partialorder %v221_v52, 0.0004427343  ;;  %v601_v21 = vunpack.c.h.bf16 %v633_v60 }
  0x7d   :  { %670 = vmatpush3.xpose.msra.mxu0 %v430_v3  ;;  %v206_v53 = vadd.f32 1.0, %v758_v49  ;;  %v209_v3 = vmul.f32 -0.5, %v758_v49  ;;  %v409_v13 = vmul.f32 %v604_v9, %v345_v35  ;;  %v119_v14 = vmax.f32 %v568_v40, 0.0  ;;  %v595_v40 = vld [vmem:[#allocation9] sm:$0xff]  }
  0x7e   :  { %671 = vmatprep.subr.mxu0 %v887_v0  ;;  %v760_v43 = vpop.eup %759  ;;  %v232_v38 = vsel %vm1232_vm13, %v229_v22, %v226_v55  ;;  %v426_v11 = vadd.f32 %v410_v25, %v362_v58  ;;  %v600_v54 = vunpack.c.l.bf16 %v633_v60  ;;  %v212_v37 = vand.u32 2147483647, %v758_v49  ;;  %v514_v55 = vld [vmem:[%s1278_s5] sm:$0x1] }
  0x7f   :  { %763 = vlog2.f32 %v206_v53  ;;  %v197_v46 = vadd.f32 1.0, %v760_v43  ;;  %v344_v45 = vadd.f32 %v232_v38, %v120_v47  ;;  %v200_v24 = vmul.f32 -0.5, %v760_v43  ;;  %v532_v58 = vld [vmem:[%s1279_s6] sm:$0x1]  ;;  %s851_s6 = scalar_lea.vmem %s552_s27, 128 }
  0x80   :  { %v210_v63 = vadd.f32 1.0, %v209_v3  ;;  %v425_v12 = vadd.f32 %v409_v13, %v361_v20  ;;  %v118_v31 = vmax.f32 %v565_v42, 0.0  ;;  %vm213_vm15 = vcmp.lt.f32.partialorder %v212_v37, 0.0004427343  ;;  %v358_v42 = vld [vmem:[#allocation6 + $0x8] sm:$0xff]  ;;  %p852_p6 = scmp.ne.s32.totalorder %s552_s27, %s851_s6  ;;  %p857_p8 = scmp.lt.s32.totalorder %s851_s6, %s851_s6 }
  0x81   :  { %672 = vmatpush3.xpose.msra.mxu0 %v429_v23  ;;  %765 = vlog2.f32 %v197_v46  ;;  %v408_v5 = vmul.f32 %v601_v21, %v344_v45  ;;  %v201_v1 = vadd.f32 1.0, %v200_v24  ;;  %v203_v23 = vand.u32 2147483647, %v760_v43  ;;  %v531_v3 = vld [vmem:[%s1277_s4] sm:$0x1] }
  0x82   :  { %673 = vmatprep.subr.mxu0 %v887_v0  ;;  %v762_v56 = vpop.eup %761  ;;  %v211_v10 = vmul.f32 %v758_v49, %v210_v63  ;;  %v597_v17 = vunpack.c.h.bf16 %v595_v40  ;;  %v117_v51 = vmax.f32 %v564_v59, 0.0  ;;  %v596_v49 = vunpack.c.l.bf16 %v595_v40  ;;  %v438_v59 = vld [vmem:[#allocation3] sm:$0xff]  ;;  %p858_p9 = por %p857_p8, %p856_p7 }
  0x83   :  { %v217_v2 = vmul.f32 0.6931472, %v762_v56  ;;  %v424_v30 = vadd.f32 %v408_v5, %v360_v57  ;;  %v202_v27 = vmul.f32 %v760_v43, %v201_v1  ;;  %vm204_vm0 = vcmp.lt.f32.partialorder %v203_v23, 0.0004427343 }
  0x84   :  { %v515_v61 = vunpack.c.l.bf16 %v514_v55  ;;  %p859_p10 = pnand %p858_p9, %p852_p6 }
  0x85   :  { %674 = vmatpush3.xpose.msra.mxu0 %v428_v33  ;;  %v223_v50 = vsel %vm1243_vm14, %v220_v8, %v217_v2  ;;  %v533_v2 = vunpack.c.l.bf16 %v532_v58  ;;  %v538_v8 = vlaneseq }
  0x86   :  { %675 = vmatprep.subr.mxu0 %v887_v0  ;;  %v343_v28 = vadd.f32 %v223_v50, %v119_v14  ;;  %v517_v53 = vand.u32 2147483647, %v515_v61  ;;  %v516_v60 = vmax.f32 %v515_v61, 0.0 }
  0x87   :  { %v539_v21 = vshrl.u32 %v538_v8, 7 }
  0x88   :  { %v407_v4 = vmul.f32 %v600_v54, %v343_v28  ;;  %v518_v43 = vsub.f32 0.0, %v517_v53 }
  0x89   :  { %676 = vmatpush3.xpose.msra.mxu0 %v427_v16  ;;  %v540_v13 = vsub.s32 0, %v539_v21 }
  0x8a   :  { %677 = vmatprep.subr.mxu0 %v887_v0  ;;  %v423_v48 = vadd.f32 %v407_v4, %v359_v7  ;;  %v519_v44 = vmul.f32 1.442695, %v518_v43 }
  0x8c   :  { %v764_v26 = vpop.eup %763  ;;  %767 = vpow2.f32 %v519_v44 }
  0x8d   :  { %678 = vmatpush3.xpose.msra.mxu0 %v426_v11  ;;  %v208_v29 = vmul.f32 0.6931472, %v764_v26 }
  0x8e   :  { %679 = vmatprep.subr.mxu0 %v887_v0  ;;  %v766_v19 = vpop.eup %765 }
  0x8f   :  { %v214_v15 = vsel %vm213_vm15, %v211_v10, %v208_v29  ;;  %v199_v62 = vmul.f32 0.6931472, %v766_v19 }
  0x90   :  { %v342_v32 = vadd.f32 %v214_v15, %v118_v31 }
  0x91   :  { %680 = vmatpush3.xpose.msra.mxu0 %v425_v12  ;;  %v205_v34 = vsel %vm204_vm0, %v202_v27, %v199_v62 }
  0x92   :  { %681 = vmatprep.subr.mxu0 %v887_v0  ;;  %v406_v33 = vmul.f32 %v597_v17, %v342_v32  ;;  %v341_v36 = vadd.f32 %v205_v34, %v117_v51 }
  0x94   :  { %v422_v22 = vadd.f32 %v406_v33, %v358_v42  ;;  %v405_v18 = vmul.f32 %v596_v49, %v341_v36 }
  0x95   :  { %682 = vmatpush3.xpose.msra.mxu0 %v424_v30 }
  0x96   :  { %683 = vmatprep.subr.mxu0 %v887_v0  ;;  %v421_v6 = vadd.f32 %v405_v18, %v357_v41 }
  0x99   :  { %684 = vmatpush3.xpose.msra.mxu0 %v423_v48  ;;  %v768_v52 = vpop.eup %767 }
  0x9a   :  { %685 = vmatprep.subr.mxu0 %v887_v0  ;;  %v521_v56 = vadd.f32 1.0, %v768_v52  ;;  %v524_v9 = vmul.f32 -0.5, %v768_v52  ;;  %v527_v25 = vand.u32 2147483647, %v768_v52 }
  0x9c   :  { %769 = vlog2.f32 %v521_v56  ;;  %v525_v47 = vadd.f32 1.0, %v524_v9  ;;  %vm528_vm1 = vcmp.lt.f32.partialorder %v527_v25, 0.0004427343 }
  0x9d   :  { %686 = vmatpush3.xpose.msra.mxu0 %v422_v22 }
  0x9e   :  { %687 = vmatprep.subr.mxu0 %v887_v0  ;;  %v526_v35 = vmul.f32 %v768_v52, %v525_v47 }
  0xa1   :  { %688 = vmatpush3.xpose.msra.mxu0 %v421_v6 }
  0xa4   :  { %690 = vmatmul.mubr.f32.vlgmr.msra.gmra.mxu0 %v438_v59 }
  0xa9   :  { %v770_v16 = vpop.eup %769 }
  0xaa   :  { %v523_v0 = vmul.f32 0.6931472, %v770_v16 }
  0xac   :  { %v529_v46 = vsel %vm528_vm1, %v526_v35, %v523_v0 }
  0xad   :  { %v530_v38 = vadd.f32 %v529_v46, %v516_v60 }
  0xaf   :  { %v534_v39 = vmul.f32 %v533_v2, %v530_v38 }
  0xb1   :  { %v535_v11 = vadd.f32 %v534_v39, %v531_v3 }
  0xb3   :  { %v541_v45 = vrot.slane %v535_v11, %v540_v13 }
 0x164   :  { %v505_v14 = vpop.f32.mrf.mxu0 }
 0x165   :  { %v543_v20 = vadd.f32 %v541_v45, %v505_v14 }
 0x166   :  { %v691_v50 = vpop.f32.mrf.mxu0 }
 0x167   :  { %544 = vst [vmem:[#allocation11] sm:$0xff] %v543_v20 }
 0x168   :  { %862 = shalt.err (!%p859_p10)
}
 0x169   :  { %554 = dma.vmem_to_hbm [thread:$0]  %s552_s27, 128, %s1280_s7, [#allocation5]  }
 0x16a   :  { %877 = dma.done.wait [#allocation5], 128  }
 0x16b   :  { %878 = vsyncadd [#allocation5], 4294967168 }
 0x16c   :  { %558 = vsyncpa [#allocation4], 1 }
 0x16d   :  { %559 = vsyncpa [#allocation7], 1 }
 0x16e   :  { %560 = vsyncpa [#allocation10], 1 }
 0x16f   :  { %561 = vsyncpa [#allocation5], 1 }

</bundles_post_ra>
